<compile_context>
chip_gen: v7x
topology: tpu7x:2x2x1
jax: 0.10.0
libtpu: 0.0.40
codegen_flags: <defaults>
</compile_context>

<pallas_src>
import jax
import jax.numpy as jnp
from jax.experimental import pallas as pl
from jax.experimental.pallas import tpu as pltpu


def _round_up(a, m):
    return (a + m - 1) // m * m


# --------------------------------------------------------------------------
# Kernel 1: h = x @ W   (computed once; output stored in the compute dtype)
# --------------------------------------------------------------------------
def _linear_kernel(x_ref, w_ref, h_ref):
    # x_ref: (tk, F_in) f32, w_ref: (F_in, Fp) f32, h_ref: (tk, Fp) bf16/f32
    h = jnp.dot(x_ref[...], w_ref[...], preferred_element_type=jnp.float32)
    h_ref[...] = h.astype(h_ref.dtype)


def _linear(x, w, *, tk, compute_dtype, vmem_limit):
    B, Nk, F_in = x.shape
    Fp = w.shape[1]
    return pl.pallas_call(
        _linear_kernel,
        out_shape=jax.ShapeDtypeStruct((B, Nk, Fp), compute_dtype),
        grid_spec=pltpu.PrefetchScalarGridSpec(
            num_scalar_prefetch=0,
            grid=(B, Nk // tk),
            in_specs=[
                pl.BlockSpec((None, tk, F_in), lambda b, i: (b, i, 0)),
                pl.BlockSpec((F_in, Fp), lambda b, i: (0, 0)),  # VMEM-resident
            ],
            out_specs=pl.BlockSpec((None, tk, Fp), lambda b, i: (b, i, 0)),
        ),
        compiler_params=pltpu.CompilerParams(
            dimension_semantics=("parallel", "parallel"),
            vmem_limit_bytes=vmem_limit,
        ),
    )(x, w)


# --------------------------------------------------------------------------
# Kernel 2: out = adj @ h + bias   (node-tiled, k-reduction with accumulator)
# --------------------------------------------------------------------------
def _gcn_agg_kernel(adj_ref, h_ref, b_ref, o_ref, acc_ref):
    # adj_ref: (tm, tk) bf16, h_ref: (tk, Fp) bf16, b_ref: (1, Fp) f32
    # o_ref:   (tm, Fp),      acc_ref: (tm, Fp) f32 scratch
    k = pl.program_id(2)

    @pl.when(k == 0)
    def _():
        acc_ref[...] = jnp.zeros_like(acc_ref)

    acc_ref[...] += jnp.dot(
        adj_ref[...], h_ref[...], preferred_element_type=jnp.float32
    )

    @pl.when(k == pl.num_programs(2) - 1)
    def _():
        # bias folded into the finalize: added once per output tile, not per k.
        o_ref[...] = (acc_ref[...] + b_ref[...]).astype(o_ref.dtype)


def dense_gcn_conv(x, adj, weight, bias, *, tm=512, tk=512,
                   compute_dtype=jnp.bfloat16,
                   vmem_limit_bytes=48 * 1024 * 1024):
    """DenseGCNConv forward: out = adj @ (x @ weight) + bias.

    x: [B, N, F_in], adj: [B, N, N], weight: [F_in, F_out] (== PyTorch W^T),
    bias: [F_out].  adj / hidden activations are carried in `compute_dtype`
    (bf16 by default; exact for 0/1 adjacency — use f32 for weighted adj if
    full precision is required).  Accumulation is always f32.
    """
    B, N, F_in = x.shape
    F_out = weight.shape[1]
    out_dtype = x.dtype

    # Lane-dense output: pad F_out to a multiple of 128.
    Fp = _round_up(F_out, 128)
    # Node tiling (clip tiles to the padded node count).
    tm = min(tm, _round_up(N, 128))
    tk = min(tk, _round_up(N, 128))
    Ni = _round_up(N, tm)   # adj rows / output rows
    Nk = _round_up(N, tk)   # adj cols / h rows

    x_p = jnp.pad(x, ((0, 0), (0, Nk - N), (0, 0)))
    adj_p = jnp.pad(adj, ((0, 0), (0, Ni - N), (0, Nk - N))).astype(compute_dtype)
    w_p = jnp.pad(weight, ((0, 0), (0, Fp - F_out)))
    b_p = jnp.pad(bias, (0, Fp - F_out)).reshape(1, Fp).astype(jnp.float32)

    # h = x @ W, computed ONCE (hoisted out of the adjacency reduction loop).
    h = _linear(x_p, w_p, tk=tk, compute_dtype=compute_dtype,
                vmem_limit=vmem_limit_bytes)                  # (B, Nk, Fp)

    out_p = pl.pallas_call(
        _gcn_agg_kernel,
        out_shape=jax.ShapeDtypeStruct((B, Ni, Fp), out_dtype),
        grid_spec=pltpu.PrefetchScalarGridSpec(
            num_scalar_prefetch=0,
            grid=(B, Ni // tm, Nk // tk),        # reduction axis (k) last
            in_specs=[
                pl.BlockSpec((None, tm, tk), lambda b, i, k: (b, i, k)),
                pl.BlockSpec((None, tk, Fp), lambda b, i, k: (b, k, 0)),
                pl.BlockSpec((1, Fp), lambda b, i, k: (0, 0)),  # VMEM-resident
            ],
            out_specs=pl.BlockSpec((None, tm, Fp), lambda b, i, k: (b, i, 0)),
            scratch_shapes=[pltpu.VMEM((tm, Fp), jnp.float32)],
        ),
        compiler_params=pltpu.CompilerParams(
            dimension_semantics=("parallel", "parallel", "arbitrary"),
            vmem_limit_bytes=vmem_limit_bytes,
        ),
    )(adj_p, h, b_p)

    return out_p[:, :N, :F_out]


def glorot_uniform(key, fan_in, fan_out, dtype=jnp.float32):
    limit = (6.0 / (fan_in + fan_out)) ** 0.5
    return jax.random.uniform(
        key, (fan_in, fan_out), minval=-limit, maxval=limit, dtype=dtype
    )


if __name__ == "__main__":
    # Small shapes; N chosen so the (B, i, k) tiling + accumulator path runs
    # with more than one reduction step (tm = tk = 128 below).
    B, N = 2, 256
    in_channels, out_channels = 16, 32

    key = jax.random.PRNGKey(0)
    kx, kadj, kw = jax.random.split(key, 3)

    x = jax.random.normal(kx, (B, N, in_channels), dtype=jnp.float32)
    # symmetric 0/1 adjacency (exact in bf16)
    a = (jax.random.uniform(kadj, (B, N, N)) > 0.5).astype(jnp.float32)
    adj = jnp.maximum(a, jnp.transpose(a, (0, 2, 1)))

    # Parameters per the module: glorot weight (stored as W^T), zero bias.
    weight = glorot_uniform(kw, in_channels, out_channels)   # [F_in, F_out]
    bias = jnp.zeros((out_channels,), dtype=jnp.float32)

    out = dense_gcn_conv(x, adj, weight, bias, tm=128, tk=128)
    out = jax.block_until_ready(out)

    # Reference (mirrors the kernel's bf16 hidden activation; adj 0/1 is exact).
    h_ref = (x @ weight).astype(jnp.bfloat16).astype(jnp.float32)
    ref = jnp.einsum("bij,bjk->bik", adj, h_ref) + bias

    assert out.shape == (B, N, out_channels)
    assert jnp.allclose(out, ref, atol=2e-2, rtol=2e-2), "mismatch vs reference"

    print("KERNEL_OK")
</pallas_src>

<mosaic_0001>
module attributes {stable_mosaic.version = 11 : i64} {
  func.func @_linear_kernel(%arg0: i32, %arg1: i32, %arg2: memref<1x128x16xf32, #tpu.memory_space<vmem>>, %arg3: memref<16x128xf32, #tpu.memory_space<vmem>>, %arg4: memref<1x128x128xbf16, #tpu.memory_space<vmem>>) attributes {dimension_semantics = [#tpu.dimension_semantics<parallel>, #tpu.dimension_semantics<parallel>], iteration_bounds = array<i64: 2, 2>, scalar_prefetch = 0 : i64, scratch_operands = 0 : i64, tpu.core_type = #tpu.core_type<tc>, window_params = [{transform_indices = @transform_0, window_bounds = array<i64: 1, 128, 16>}, {pipeline_mode = #tpu.pipeline_mode<synchronous>, transform_indices = @transform_1, window_bounds = array<i64: 16, 128>}, {transform_indices = @transform_2, window_bounds = array<i64: 1, 128, 128>}]} {
    %c0 = arith.constant 0 : index
    %c0_0 = arith.constant 0 : index
    %c0_1 = arith.constant 0 : index
    %0 = vector.load %arg2[%c0, %c0_0, %c0_1] : memref<1x128x16xf32, #tpu.memory_space<vmem>>, vector<1x128x16xf32>
    %1 = vector.shape_cast %0 : vector<1x128x16xf32> to vector<128x16xf32>
    %c0_2 = arith.constant 0 : index
    %c0_3 = arith.constant 0 : index
    %2 = vector.load %arg3[%c0_2, %c0_3] : memref<16x128xf32, #tpu.memory_space<vmem>>, vector<16x128xf32>
    %cst = arith.constant dense<0.000000e+00> : vector<128x128xf32>
    %3 = tpu.matmul %1, %2, %cst {dimension_numbers = #tpu.dot_dimension_numbers<[1], [0], [0], [1], [0, 0, 1, 1], [], []>} : vector<128x16xf32>, vector<16x128xf32>, vector<128x128xf32> -> vector<128x128xf32>
    %4 = arith.truncf %3 : vector<128x128xf32> to vector<128x128xbf16>
    %c0_4 = arith.constant 0 : index
    %c0_5 = arith.constant 0 : index
    %c0_6 = arith.constant 0 : index
    %5 = vector.load %arg4[%c0_4, %c0_5, %c0_6] : memref<1x128x128xbf16, #tpu.memory_space<vmem>>, vector<1x128x128xbf16>
    %6 = vector.shape_cast %5 : vector<1x128x128xbf16> to vector<128x128xbf16>
    %7 = vector.shape_cast %4 : vector<128x128xbf16> to vector<1x128x128xbf16>
    tpu.vector_store %arg4[%c0_4, %c0_5, %c0_6], %7 {strides = array<i32>} : memref<1x128x128xbf16, #tpu.memory_space<vmem>>, vector<1x128x128xbf16>,
    return
  }
  func.func @transform_0(%arg0: i32, %arg1: i32) -> (i32, i32, i32) {
    %c0_i32 = arith.constant 0 : i32
    %c0_i32_0 = arith.constant 0 : i32
    return %arg0, %arg1, %c0_i32 : i32, i32, i32
  }
  func.func @transform_1(%arg0: i32, %arg1: i32) -> (i32, i32) {
    %c0_i32 = arith.constant 0 : i32
    %c0_i32_0 = arith.constant 0 : i32
    %c0_i32_1 = arith.constant 0 : i32
    return %c0_i32, %c0_i32_0 : i32, i32
  }
  func.func @transform_2(%arg0: i32, %arg1: i32) -> (i32, i32, i32) {
    %c0_i32 = arith.constant 0 : i32
    %c0_i32_0 = arith.constant 0 : i32
    return %arg0, %arg1, %c0_i32 : i32, i32, i32
  }
}

</mosaic_0001>

<bundles_post_ra>
// kernel: tpu_custom_call.1
= control target key start
LH: loop header
LB: loop body
LE: loop exit
PB: predicated region body
PF: predicated region fallthrough
CT: control target
= control target key end

     0   :  { %7 = vsyncpa [#allocation3], 0  ;;  %s1092_s0 = inlined_call_operand.vmem [shape: f32[2,256,16], index: 0, kind: input, shape index: {}]   ;;  %s1093_s1 = inlined_call_operand.vmem [shape: f32[16,128], index: 1, kind: input, shape index: {}]   ;;  %s1094_s2 = inlined_call_operand.hbm [shape: bf16[2,256,128], index: 2, kind: output, shape index: {}]  }
   0x1   :  { %9 = vsyncpa [#allocation3 + $0x1], 0  ;;  %s912_s9 = smov 0   ;;  %s914_s10 = smov 0  }
   0x2   :  { %s916_s11 = smov 0   ;;  %s918_s12 = smov 0  }
   0x3   :  { %s920_s13 = smov 0   ;;  %s922_s14 = smov 0  }
   0x4   :  { %s924_s15 = smov 0   ;;  %s926_s16 = smov 0  }
   0x5 LB: > { %s563_s17 = sadd.s32 4294967295, %s892_s16   ;;  %s564_s18 = sadd.s32 4294967294, %s892_s16   ;;  %s892_s16 = sphi %s926_s16, %s15_s16   ;;  %s888_s15 = sphi %s924_s15, %s1103_s15   ;;  %s884_s14 = sphi %s922_s14, %s1102_s14   ;;  %s880_s13 = sphi %s920_s13, %s1101_s13   ;;  %s876_s12 = sphi %s918_s12, %s1100_s12   ;;  %s872_s11 = sphi %s916_s11, %s1099_s11   ;;  %s868_s10 = sphi %s914_s10, %s1098_s10   ;;  %s864_s9 = sphi %s912_s9, %s1097_s9  }
   0x6   : > { %s24_s19 = sadd.s32 1, %s884_s14  ;;  %s27_s20 = sadd.s32 1, %s888_s15 }
   0x7   : > { %p25_p0 = scmp.ge.s32.totalorder %s24_s19, 2  ;;  %p95_p1 = scmp.ne.s32.totalorder %s872_s11, %s868_s10 }
   0x8   : > { %p96_p2 = scmp.eq.s32.totalorder %s563_s17, 3  ;;  %p101_p5 = scmp.ne.s32.totalorder %s868_s10, %s864_s9 }
   0x9   : > { %s1105_s19 = smov (%p25_p0, %s24_s19), 0  ;;  %s1107_s20 = smov (!%p25_p0, %s27_s20), %s888_s15 }
   0xa   : > { %s81_s21 = ssub.s32 %s884_s14, %s1105_s19  ;;  %p963_p3 = por %p96_p2, %p95_p1 }
   0xb   : > { %p29_p4 = scmp.ge.s32.totalorder %s1107_s20, 2  ;;  %p102_p6 = scmp.eq.s32.totalorder %s564_s18, 3 }
   0xc   : > { %p567_p7 = scmp.ge.s32.totalorder %s892_s16, 1  ;;  %p136_p9 = scmp.lt.s32.totalorder %s892_s16, 5 }
   0xd   : > { %s1109_s20 = smov (%p29_p4, %s1107_s20), 0  ;;  %p972_p8 = por %p102_p6, %p101_p5 }
   0xe   : > { %s80_s24 = ssub.s32 %s888_s15, %s1109_s20  ;;  %s85_s25 = sadd.s32 1, %s872_s11 }
   0xf   : > { %s82_s26 = sor.u32 %s81_s21, %s80_s24  ;;  %p137_p10 = pnand %p567_p7, %p136_p9 }
  0x10   : > { %p83_p11 = scmp.eq.s32.totalorder %s82_s26, 0  ;;  %v189_v0 = vld [vmem:[%s1093_s1] sm:$0xff] (!%p137_p10)  ;;  %v190_v1 = vld [vmem:[%s1093_s1 + $0x8] sm:$0xff] (!%p137_p10)  ;;  %s990_s4 = sshll.u32 (!%p137_p10), %s876_s12, 4  ;;  %vm191_vm0 = vcmask (!%p137_p10), 130048  }
  0x11   : > { %140 = sbr.rel (%p137_p10) target bundleno = 275 (0x113), region = 28  ;;  %p163_p12 = scmp.lt.s32.totalorder (!%p137_p10), %s880_s13, 1  ;;  %v719_v2 = vpack.c.bf16 (!%p137_p10), %v190_v1, %v189_v0 }
  0x12   : > { %s981_s27 = scalar_select %p83_p11, %s872_s11, %s85_s25  }
  0x13   : > { %p165_p13 = scmp.lt.s32.totalorder (!%p137_p10), %s990_s4, 31  ;;  %720 = vmatprep.subr.bf16.mxu0 (!%p137_p10), %v719_v2  ;;  %723 = vmatprep.subr.bf16.mxu1 (!%p137_p10), %v719_v2  ;;  %s159_s24 = sand.u32 (!%p137_p10), 1, %s868_s10  }
  0x14   : > { %722 = vmatpush3.bf16.msra.mxu0 (!%p137_p10), %v719_v2  ;;  %724 = vmatpush3.bf16.msra.mxu1 (!%p137_p10), %v719_v2  ;;  %s568_s25 = sshll.u32 (!%p137_p10), %s159_s24, 6  ;;  %s606_s28 = sshll.u32 (!%p137_p10), %s880_s13, 5 }
  0x15   : > { %s1018_s26 = scalar_lea.vmem (!%p137_p10), [#allocation2], %s568_s25  ;;  %s478_s29 = sadd.s32 (!%p137_p10), %s606_s28, %s990_s4 }
  0x16   : > { %s607_s30 = sshll.u32 (!%p137_p10), %s478_s29, 6 }
  0x18   : > { %s164_s5 = scalar_select %p163_p12, %s880_s13, 1 }
  0x19   : > { %s166_s6 = scalar_select %p165_p13, %s990_s4, 31 }
  0x1a   : > { %s570_s7 = sshll.u32 %s164_s5, 5  ;;  %s481_s13 = sshll.u32 %s1018_s26, 4  ;;  %s1034_s13 = int_to_ptr.vmem [resolvable:$true] %s481_s13 }
  0x1b   : > { %s168_s8 = sadd.s32 %s570_s7, %s166_s6  ;;  %s1032_s5 = scalar_lea.hbm %s1094_s2, %s607_s30 }
  0x1c   : > { %s571_s17 = sshll.u32 %s168_s8, 3  ;;  %s1040_s6 = scalar_lea.sflag [#allocation3], %s159_s24 }
  0x1d   : > { %s170_s12 = scalar_lea.vmem %s1092_s0, %s571_s17  ;;  %s798_s7 = scalar_lea.vmem %s1034_s13, 1024 }
  0x1e   : > { %v173_v3 = vld [vmem:[%s170_s12] sm:$0xff]  ;;  %v174_v5 = vld [vmem:[%s170_s12 + $0x8] sm:$0xff]  ;;  %v175_v7 = vld [vmem:[%s170_s12 + $0x10] sm:$0xff]  ;;  %p799_p0 = scmp.ne.s32.totalorder %s1034_s13, %s798_s7  ;;  %s894_s8 = smov [#allocation2]  }
  0x1f   : > { %v181_v4 = vld [vmem:[%s170_s12 + $0x40] sm:$0xff]  ;;  %695 = vmatprep.mubr.msk.f32.mxu0 %vm191_vm0, %v173_v3  ;;  %v182_v6 = vld [vmem:[%s170_s12 + $0x48] sm:$0xff]  ;;  %v183_v8 = vld [vmem:[%s170_s12 + $0x50] sm:$0xff]  ;;  %s802_s17 = sshll.u32 %s894_s8, 4  ;;  %s803_s17 = int_to_ptr.vmem [resolvable:$false] %s802_s17 }
  0x20   : > { %707 = vmatprep.mubr.msk.f32.mxu1 %vm191_vm0, %v181_v4  ;;  %696 = vmatmul.mubr.msk.f32.vlgmr.msra.gmra.mrb[0].mxu0 %vm191_vm0, %v174_v5  ;;  %v176_v9 = vld [vmem:[%s170_s12 + $0x18] sm:$0xff]  ;;  %v177_v11 = vld [vmem:[%s170_s12 + $0x20] sm:$0xff]  ;;  %v178_v13 = vld [vmem:[%s170_s12 + $0x28] sm:$0xff]  ;;  %p800_p1 = pnand %p799_p0, %p963_p3  ;;  %s804_s18 = scalar_lea.vmem %s803_s17, 2048 }
  0x21   : > { %708 = vmatmul.mubr.msk.f32.vlgmr.msra.gmra.mrb[0].mxu1 %vm191_vm0, %v182_v6  ;;  %698 = vmatprep.mubr.msk.f32.mxu0 %vm191_vm0, %v175_v7  ;;  %v184_v10 = vld [vmem:[%s170_s12 + $0x58] sm:$0xff]  ;;  %v185_v12 = vld [vmem:[%s170_s12 + $0x60] sm:$0xff]  ;;  %v186_v14 = vld [vmem:[%s170_s12 + $0x68] sm:$0xff]  ;;  %p805_p4 = scmp.lt.s32.totalorder %s1034_s13, %s803_s17  ;;  %p806_p5 = scmp.lt.s32.totalorder %s804_s18, %s798_s7 }
  0x22   : > { %710 = vmatprep.mubr.msk.f32.mxu1 %vm191_vm0, %v183_v8  ;;  %v179_v15 = vld [vmem:[%s170_s12 + $0x30] sm:$0xff]  ;;  %v180_v17 = vld [vmem:[%s170_s12 + $0x38] sm:$0xff]  ;;  %p801_p2 = pneg %p800_p1 }
  0x23   : > { %v187_v16 = vld [vmem:[%s170_s12 + $0x70] sm:$0xff]  ;;  %v188_v18 = vld [vmem:[%s170_s12 + $0x78] sm:$0xff]  ;;  %p807_p6 = por %p806_p5, %p805_p4 }
  0x24   : > { %699 = vmatmul.mubr.msk.f32.gmra.mrb[2].mxu0 %vm191_vm0, %v176_v9 }
  0x25   : > { %711 = vmatmul.mubr.msk.f32.gmra.mrb[2].mxu1 %vm191_vm0, %v184_v10  ;;  %701 = vmatprep.mubr.msk.f32.mxu0 %vm191_vm0, %v177_v11  ;;  %p808_p7 = pnand %p807_p6, %p801_p2 }
  0x26   : > { %713 = vmatprep.mubr.msk.f32.mxu1 %vm191_vm0, %v185_v12 }
  0x28   : > { %702 = vmatmul.mubr.msk.f32.gmra.mrb[4].mxu0 %vm191_vm0, %v178_v13 }
  0x29   : > { %714 = vmatmul.mubr.msk.f32.gmra.mrb[4].mxu1 %vm191_vm0, %v186_v14  ;;  %704 = vmatprep.mubr.msk.f32.mxu0 %vm191_vm0, %v179_v15 }
  0x2a   : > { %716 = vmatprep.mubr.msk.f32.mxu1 %vm191_vm0, %v187_v16 }
  0x2c   : > { %705 = vmatmul.mubr.msk.f32.gmra.mrb[6].mxu0 %vm191_vm0, %v180_v17 }
  0x2d   : > { %717 = vmatmul.mubr.msk.f32.gmra.mrb[6].mxu1 %vm191_vm0, %v188_v18 }
  0xf3   : > { %v697_v19 = vpop.f32.mrb[0].mxu0 }
  0xf4   : > { %v709_v20 = vpop.f32.mrb[0].mxu1  ;;  %v306_v21 = vpop.f32.mrb[1].mxu0 }
  0xf5   : > { %v346_v22 = vpop.f32.mrb[1].mxu1  ;;  %v629_v23 = vpack.c.bf16 %v697_v19, %v306_v21 }
  0xf6   : > { %v649_v24 = vpack.c.bf16 %v709_v20, %v346_v22 }
  0xf7   : > { %630 = vst [vmem:[%s1018_s26] sm:$0xff] %v629_v23   ;;  %v700_v25 = vpop.f32.mrb[2].mxu0 }
  0xf8   : > { %669 = vst [vmem:[%s1018_s26 + $0x20] sm:$0xff] %v649_v24   ;;  %v712_v26 = vpop.f32.mrb[2].mxu1  ;;  %v316_v27 = vpop.f32.mrb[3].mxu0 }
  0xf9   : > { %v356_v28 = vpop.f32.mrb[3].mxu1  ;;  %v634_v29 = vpack.c.bf16 %v700_v25, %v316_v27 }
  0xfa   : > { %v654_v30 = vpack.c.bf16 %v712_v26, %v356_v28 }
  0xfb   : > { %666 = vst [vmem:[%s1018_s26 + $0x8] sm:$0xff] %v634_v29   ;;  %v703_v31 = vpop.f32.mrb[4].mxu0 }
  0xfc   : > { %670 = vst [vmem:[%s1018_s26 + $0x28] sm:$0xff] %v654_v30   ;;  %v715_v32 = vpop.f32.mrb[4].mxu1  ;;  %v326_v33 = vpop.f32.mrb[5].mxu0 }
  0xfd   : > { %v366_v34 = vpop.f32.mrb[5].mxu1  ;;  %v639_v35 = vpack.c.bf16 %v703_v31, %v326_v33 }
  0xfe   : > { %v659_v36 = vpack.c.bf16 %v715_v32, %v366_v34 }
  0xff   : > { %667 = vst [vmem:[%s1018_s26 + $0x10] sm:$0xff] %v639_v35   ;;  %v706_v37 = vpop.f32.mrb[6].mxu0 }
 0x100   : > { %671 = vst [vmem:[%s1018_s26 + $0x30] sm:$0xff] %v659_v36   ;;  %v718_v38 = vpop.f32.mrb[6].mxu1  ;;  %v336_v39 = vpop.f32.mrb[7].mxu0 }
 0x101   : > { %v376_v40 = vpop.f32.mrb[7].mxu1  ;;  %v644_v41 = vpack.c.bf16 %v706_v37, %v336_v39 }
 0x102   : > { %v664_v42 = vpack.c.bf16 %v718_v38, %v376_v40 }
 0x103   : > { %668 = vst [vmem:[%s1018_s26 + $0x18] sm:$0xff] %v644_v41  }
 0x104   : > { %672 = vst [vmem:[%s1018_s26 + $0x38] sm:$0xff] %v664_v42  }
 0x105   : > { %811 = shalt.err (!%p808_p7)
}
 0x106   : > { %s812_s21 = scalar_lea.hbm %s1032_s5, 1024  ;;  %s816_s25 = scalar_lea.hbm %s1094_s2, 4096 }
 0x107   : > { %p813_p9 = scmp.ne.s32.totalorder %s1032_s5, %s812_s21  ;;  %p817_p12 = scmp.lt.u32.totalorder %s1032_s5, %s1094_s2 }
 0x108   : > { %p818_p13 = scmp.lt.u32.totalorder %s816_s25, %s812_s21  ;;  %p820_p1 = scmp.lt.u32.totalorder %s812_s21, %s1032_s5 }
 0x109   : > { %p814_p10 = pnand %p813_p9, %p963_p3 }
 0x10a   : > { %p819_p0 = por %p818_p13, %p817_p12 }
 0x10b   : > { %p815_p11 = pneg %p814_p10 }
 0x10c   : > { %p821_p2 = por %p820_p1, %p819_p0 }
 0x10e   : > { %p822_p4 = pnand %p821_p2, %p815_p11 }
 0x110   : > { %825 = shalt.err (!%p822_p4)
}
 0x111   : > { %s895_s29 = smov 64   ;;  %s896_s30 = smov 4  }
 0x112   : > { %725 = dma.vmem_to_hbm [thread:$0]  (%p963_p3), %s1034_s13, 1024, %s1032_s5, %s1040_s6, %s895_s29, %s895_s29, %s896_s30  }
 0x113 PF: > { %p731_p5 = scmp.ge.s32.totalorder %s892_s16, 2  ;;  %s496_s3 = sand.u32 1, %s864_s9  }
 0x114   : > { %s497_s4 = scalar_lea.sflag [#allocation3], %s496_s3 }
 0x115   : > { %p728_p6 = pnand %p731_p5, %p972_p8 }
 0x117   : > { %859 = dma.done.wait (!%p728_p6), %s497_s4, 1024  }
 0x118   : > { %861 = vsyncadd (!%p728_p6), %s497_s4, 4294966272  ;;  %s15_s16 = sadd.s32 1, %s892_s16   ;;  %s1097_s9 = smov %s868_s10 }
 0x119   : > { %p12_p7 = scmp.ge.s32.totalorder %s15_s16, 6   ;;  %s1098_s10 = smov %s872_s11 }
 0x11a   : > { %s1099_s11 = smov %s981_s27  ;;  %s1100_s12 = smov %s884_s14 }
 0x11b   : > { %s1101_s13 = smov %s888_s15  ;;  %s1102_s14 = smov %s1105_s19 }
 0x11c   : > { %s1103_s15 = smov %s1109_s20  ;;  %14 = sbr.rel (!%p12_p7) target bundleno = 5 (0x5), region = 63 }
 0x123   :  { %502 = vsyncpa [#allocation3], 1 }
 0x124   :  { %504 = vsyncpa [#allocation3 + $0x1], 1 }

</bundles_post_ra>
